<compile_context>
chip_gen: v5e
topology: v5e:2x2
jax: 0.10.0
libtpu: 0.0.40
codegen_flags: <defaults>
</compile_context>

<pallas_src>
import functools
import math

import jax
import jax.numpy as jnp
from jax.experimental import pallas as pl
from jax.experimental.pallas import tpu as pltpu


def _round_up(x, m):
    return ((x + m - 1) // m) * m


# -----------------------------------------------------------------------------
# Wrapper-side layout helpers (tiny / cacheable).
# -----------------------------------------------------------------------------
def build_pilot_matrix(X_theta, *, M, P, dtype=jnp.bfloat16):
    """A = [[Xr, -Xi], [Xi, Xr]]  of shape (2L, 2M)."""
    scale = math.sqrt(P / M)
    xt = X_theta.astype(jnp.float32)
    xr = scale * jnp.cos(xt)
    xi = scale * jnp.sin(xt)
    top = jnp.concatenate([xr, -xi], axis=1)
    bot = jnp.concatenate([xi, xr], axis=1)
    return jnp.concatenate([top, bot], axis=0).astype(dtype)          # (2L, 2M)


def pack_channels(H_real, H_imag, *, dtype=jnp.bfloat16):
    """Hcat = [[Hr^T], [Hi^T]] of shape (2M, N).  Cache this when H is reused."""
    return jnp.concatenate(
        [H_real.T.astype(dtype), H_imag.T.astype(dtype)], axis=0)     # (2M, N)


# -----------------------------------------------------------------------------
# In-kernel counter-based PRNG (pure jnp ops -> works on TPU and in interpret).
# -----------------------------------------------------------------------------
def _hash_u32(x):
    # "lowbias32" xorshift-multiply finalizer: good avalanche on 32-bit counters.
    x = x ^ (x >> 16)
    x = x * jnp.uint32(0x7FEB352D)
    x = x ^ (x >> 15)
    x = x * jnp.uint32(0x846CA68B)
    x = x ^ (x >> 16)
    return x


def _bits_to_unit(bits_u32):
    # Top 24 bits -> [0, 1).  Goes through int32 to keep the convert Mosaic-friendly.
    top = (bits_u32 >> 8).astype(jnp.int32)
    return top.astype(jnp.float32) * jnp.float32(1.0 / 16777216.0)


# -----------------------------------------------------------------------------
# Kernel: one fused MXU matmul per batch block (+ optional in-kernel noise).
# -----------------------------------------------------------------------------
def _apply_kernel(noise_std, l_half, n_total, seed_ref, a_ref, hcat_ref, out_ref):
    # (2L, 2M)bf16 @ (2M, Nb)bf16 -> (2L, Nb)f32; single MXU push.
    z = jnp.dot(a_ref[...], hcat_ref[...], preferred_element_type=jnp.float32)

    if noise_std != 0.0:                       # trace-time constant (recompiles per value)
        n_blk = out_ref.shape[1]
        col0 = pl.program_id(0) * n_blk
        rows = jax.lax.broadcasted_iota(jnp.int32, (l_half, n_blk), 0)
        cols = jax.lax.broadcasted_iota(jnp.int32, (l_half, n_blk), 1) + col0
        # One unique 32-bit counter per (row, col) pair; *2 gives two substreams.
        ctr = (rows * n_total + cols).astype(jnp.uint32) * jnp.uint32(2)
        sd = seed_ref[0].astype(jnp.uint32) * jnp.uint32(0x9E3779B9)  # golden-ratio mix
        b1 = _hash_u32(ctr + sd)
        b2 = _hash_u32(ctr + jnp.uint32(1) + sd)
        u1 = 1.0 - _bits_to_unit(b1)                                  # (0, 1] -> safe log
        u2 = _bits_to_unit(b2)                                        # [0, 1)
        # Dual-output Box-Muller: one (u1, u2) pair -> two independent normals,
        # filling the top (real) and bottom (imag) halves of the (2L, Nb) block.
        r = jnp.sqrt(-2.0 * jnp.log(u1))
        ang = jnp.float32(2.0 * math.pi) * u2
        noise = jnp.concatenate([r * jnp.cos(ang), r * jnp.sin(ang)], axis=0)
        z = z + jnp.float32(noise_std) * noise

    out_ref[...] = z


# -----------------------------------------------------------------------------
# Wrapper matching the PyTorch module's forward(X_theta, H_real, H_imag, noise_std).
# -----------------------------------------------------------------------------
def subarray_pilot_net(X_theta, H_real, H_imag, noise_std, *, M, P,
                       seed=0, n_block=16384, h_cat=None,
                       return_transposed=False, compute_dtype=jnp.bfloat16):
    L, m_in = X_theta.shape
    N = H_real.shape[0]
    assert m_in == M and H_real.shape == (N, M) and H_imag.shape == (N, M)
    noise_std = float(noise_std)

    # Pilot matrix A (2L, 2M): tiny, built with plain jnp (no separate kernel).
    a_mat = build_pilot_matrix(X_theta, M=M, P=P, dtype=compute_dtype)

    # Channel matrix in the lane-dense contraction layout (cacheable by callers).
    if h_cat is None:
        h_cat = pack_channels(H_real, H_imag, dtype=compute_dtype)    # (2M, N)
    else:
        h_cat = h_cat.astype(compute_dtype)

    # Tile the batch axis: big lane tiles, but >=2 grid steps when N allows so
    # both TensorCores get work on v7x.  Last-block padding kept small.
    n128 = _round_up(N, 128)
    num_blocks = max(1, -(-n128 // n_block))
    if n128 >= 256:
        num_blocks = max(2, num_blocks)
    n_blk = _round_up(-(-n128 // num_blocks), 128)
    num_blocks = -(-n128 // n_blk)
    n_pad = n_blk * num_blocks
    if n_pad != N:
        h_cat = jnp.pad(h_cat, ((0, 0), (0, n_pad - N)))

    seed_arr = jnp.asarray([seed], dtype=jnp.int32)

    zt = pl.pallas_call(
        functools.partial(_apply_kernel, noise_std, L, n_pad),
        out_shape=jax.ShapeDtypeStruct((2 * L, n_pad), jnp.float32),
        grid_spec=pltpu.PrefetchScalarGridSpec(
            num_scalar_prefetch=1,                                    # seed -> SMEM
            grid=(num_blocks,),
            in_specs=[
                pl.BlockSpec((2 * L, 2 * M), lambda i, s: (0, 0)),    # A, resident
                pl.BlockSpec((2 * M, n_blk), lambda i, s: (0, i)),    # Hcat block
            ],
            out_specs=pl.BlockSpec((2 * L, n_blk), lambda i, s: (0, i)),
        ),
        compiler_params=pltpu.CompilerParams(
            dimension_semantics=("parallel",),                        # megacore-shardable
            vmem_limit_bytes=32 * 1024 * 1024,                        # v7x-safe budget
        ),
    )(seed_arr, a_mat, h_cat)

    zt = zt[:, :N]                        # drop padded (noisy) columns
    if return_transposed:
        return zt                         # lane-dense (2L, N) layout
    return zt.T                           # PyTorch layout (N, 2L)


if __name__ == "__main__":
    # Small shapes consistent with the module: M antennas, L pilot symbols,
    # N channel realizations (tiled along the lane axis; here 2 grid steps).
    M, L, N = 16, 8, 300
    P = 4.0

    key = jax.random.PRNGKey(0)
    k1, k2, k3 = jax.random.split(key, 3)
    X_theta = jax.random.uniform(k1, (L, M), dtype=jnp.float32,
                                 minval=0.0, maxval=2.0 * math.pi)
    H_real = jax.random.normal(k2, (N, M), dtype=jnp.float32)
    H_imag = jax.random.normal(k3, (N, M), dtype=jnp.float32)

    # 1) Noiseless pass.
    out0 = subarray_pilot_net(X_theta, H_real, H_imag, 0.0, M=M, P=P)
    out0 = jax.block_until_ready(out0)
    assert out0.shape == (N, 2 * L)

    # Reference with the same bf16 input rounding the kernel sees (tight check).
    hp = jax.lax.Precision.HIGHEST
    a_bf = build_pilot_matrix(X_theta, M=M, P=P, dtype=jnp.bfloat16).astype(jnp.float32)
    h_bf = pack_channels(H_real, H_imag, dtype=jnp.bfloat16).astype(jnp.float32)
    y_ref_bf = jnp.dot(a_bf, h_bf, precision=hp).T                    # (N, 2L)
    assert jnp.allclose(out0, y_ref_bf, atol=2e-3, rtol=2e-3)

    # Full-f32 PyTorch-semantics reference (loose check: bf16 input rounding).
    scale = math.sqrt(P / M)
    x_real = scale * jnp.cos(X_theta)
    x_imag = scale * jnp.sin(X_theta)
    y_real = (jnp.matmul(H_real, x_real.T, precision=hp)
              - jnp.matmul(H_imag, x_imag.T, precision=hp))
    y_imag = (jnp.matmul(H_imag, x_real.T, precision=hp)
              + jnp.matmul(H_real, x_imag.T, precision=hp))
    y_ref = jnp.concatenate([y_real, y_imag], axis=1)
    assert float(jnp.max(jnp.abs(out0 - y_ref))) < 0.1

    # 2) Noisy pass: in-kernel counter-hash PRNG (different stream than
    #    torch.normal), so check residual statistics rather than bit-exactness.
    noise_std = 0.1
    out1 = subarray_pilot_net(X_theta, H_real, H_imag, noise_std,
                              M=M, P=P, seed=123)
    out1 = jax.block_until_ready(out1)
    resid = out1 - out0
    assert out1.shape == (N, 2 * L)
    assert bool(jnp.all(jnp.isfinite(out1)))
    assert abs(float(jnp.mean(resid))) < 0.01
    assert 0.085 < float(jnp.std(resid)) < 0.115

    print("KERNEL_OK")
</pallas_src>

<mosaic_0001>
module attributes {stable_mosaic.version = 11 : i64} {
  func.func @_apply_kernel(%arg0: i32, %arg1: memref<1xi32, #tpu.memory_space<smem>>, %arg2: memref<16x32xbf16, #tpu.memory_space<vmem>>, %arg3: memref<32x256xbf16, #tpu.memory_space<vmem>>, %arg4: memref<16x256xf32, #tpu.memory_space<vmem>>) attributes {dimension_semantics = [#tpu.dimension_semantics<parallel>], iteration_bounds = array<i64: 2>, scalar_prefetch = 1 : i64, scratch_operands = 0 : i64, tpu.core_type = #tpu.core_type<tc>, window_params = [{pipeline_mode = #tpu.pipeline_mode<synchronous>, transform_indices = @transform_0, window_bounds = array<i64: 16, 32>}, {transform_indices = @transform_1, window_bounds = array<i64: 32, 256>}, {transform_indices = @transform_2, window_bounds = array<i64: 16, 256>}]} {
    %c0 = arith.constant 0 : index
    %c0_0 = arith.constant 0 : index
    %0 = vector.load %arg2[%c0, %c0_0] : memref<16x32xbf16, #tpu.memory_space<vmem>>, vector<16x32xbf16>
    %c0_1 = arith.constant 0 : index
    %c0_2 = arith.constant 0 : index
    %1 = vector.load %arg3[%c0_1, %c0_2] : memref<32x256xbf16, #tpu.memory_space<vmem>>, vector<32x256xbf16>
    %cst = arith.constant dense<0.000000e+00> : vector<16x256xf32>
    %2 = tpu.matmul %0, %1, %cst {dimension_numbers = #tpu.dot_dimension_numbers<[1], [0], [0], [1], [0, 0, 1, 1], [], []>} : vector<16x32xbf16>, vector<32x256xbf16>, vector<16x256xf32> -> vector<16x256xf32>
    %c0_3 = arith.constant 0 : index
    %c0_4 = arith.constant 0 : index
    %3 = vector.load %arg4[%c0_3, %c0_4] : memref<16x256xf32, #tpu.memory_space<vmem>>, vector<16x256xf32>
    tpu.vector_store %arg4[%c0_3, %c0_4], %2 {strides = array<i32>} : memref<16x256xf32, #tpu.memory_space<vmem>>, vector<16x256xf32>,
    return
  }
  func.func @transform_0(%arg0: i32, %arg1: memref<1xi32, #tpu.memory_space<smem>>) -> (i32, i32) {
    %c0_i32 = arith.constant 0 : i32
    %c0_i32_0 = arith.constant 0 : i32
    %c0_i32_1 = arith.constant 0 : i32
    return %c0_i32, %c0_i32_0 : i32, i32
  }
  func.func @transform_1(%arg0: i32, %arg1: memref<1xi32, #tpu.memory_space<smem>>) -> (i32, i32) {
    %c0_i32 = arith.constant 0 : i32
    %c0_i32_0 = arith.constant 0 : i32
    return %c0_i32, %arg0 : i32, i32
  }
  func.func @transform_2(%arg0: i32, %arg1: memref<1xi32, #tpu.memory_space<smem>>) -> (i32, i32) {
    %c0_i32 = arith.constant 0 : i32
    %c0_i32_0 = arith.constant 0 : i32
    return %c0_i32, %arg0 : i32, i32
  }
}

</mosaic_0001>

<bundles_post_ra>
// kernel: tpu_custom_call.1
= control target key start
LH: loop header
LB: loop body
LE: loop exit
PB: predicated region body
PF: predicated region fallthrough
CT: control target
= control target key end

     0   :  { %9 = vsyncpa [#allocation5], 0  ;;  %s765_s0 = inlined_call_operand.<no memory space> [shape: s32[1], index: 0, kind: input, shape index: {}]   ;;  %s766_s1 = inlined_call_operand.hbm [shape: bf16[16,32], index: 1, kind: input, shape index: {}]   ;;  %s767_s2 = inlined_call_operand.hbm [shape: bf16[32,512], index: 2, kind: input, shape index: {}]   ;;  %s768_s3 = inlined_call_operand.hbm [shape: f32[16,512], index: 3, kind: output, shape index: {}]  }
   0x1   :  { %10 = vsyncpa [#allocation8], 0 }
   0x2   :  { %12 = vsyncpa [#allocation8 + $0x1], 0 }
   0x3   :  { %13 = vsyncpa [#allocation6], 0 }
   0x4   :  { %15 = vsyncpa [#allocation6 + $0x1], 0  ;;  %s625_s12 = smov 0   ;;  %s627_s13 = smov 0  }
   0x5   :  { %s629_s14 = smov 0   ;;  %s631_s0 = smov 0  }
   0x6 LB: > { %s646_s15 = sadd.s32 4294967295, %s594_s0   ;;  %s354_s16 = sadd.s32 4294967294, %s594_s0   ;;  %s594_s0 = sphi %s631_s0, %s778_s0   ;;  %s590_s14 = sphi %s629_s14, %s777_s14   ;;  %s586_s13 = sphi %s627_s13, %s776_s13   ;;  %s582_s12 = sphi %s625_s12, %s775_s12  }
   0x7   : > { %p62_p0 = scmp.ne.s32.totalorder %s586_s13, %s582_s12  ;;  %p63_p1 = scmp.eq.s32.totalorder %s646_s15, 0 }
   0x8   : > { %p86_p2 = scmp.eq.s32.totalorder %s646_s15, 1  ;;  %p92_p3 = scmp.eq.s32.totalorder %s354_s16, 1 }
   0x9   : > { %p655_p4 = por %p63_p1, %p62_p0  ;;  %p355_p5 = scmp.ge.s32.totalorder %s594_s0, 1 }
   0xa   : > { %p660_p6 = por %p92_p3, %p62_p0  ;;  %p99_p7 = scmp.lt.s32.totalorder %s594_s0, 3 }
   0xb   : > { %s110_s21 = sshll.u32 %s766_s1, 4  ;;  %s596_s23 = smov [#allocation4]   ;;  %s111_s21 = int_to_ptr.hbm [resolvable:$true] %s110_s21 }
   0xc   : > { %p668_p8 = pnand %p355_p5, %p99_p7  ;;  %s112_s24 = sshll.u32 %s596_s23, 4  ;;  %s113_s24 = int_to_ptr.vmem [resolvable:$true] %s112_s24 }
   0xd   : > { %s678_s25 = sadd.s32 1, %s594_s0   ;;  %s597_s26 = smov 64  }
   0xe   : > { %p407_p9 = pneg %p668_p8  ;;  %s598_s27 = smov 4  }
   0xf   : > { %s46_s28 = ssub.s32 %s594_s0, %s678_s25  ;;  %s49_s29 = sadd.s32 1, %s590_s14 }
  0x10   : > { %p408_p10 = pnand %p407_p9, %p63_p1  ;;  %p47_p12 = scmp.eq.s32.totalorder %s46_s28, 0 }
  0x11   : > { %p56_p13 = scmp.ne.s32.totalorder %s590_s14, %s586_s13  ;;  %p57_p0 = scmp.eq.s32.totalorder %s594_s0, 0 }
  0x12   : > { %410 = dma.hbm_to_vmem [thread:$0]  (!%p408_p10), %s111_s21, 128, %s113_s24, [#allocation5], %s597_s26, %s597_s26, %s598_s27  }
  0x13   : > { %p420_p3 = scmp.lt.s32.totalorder %s594_s0, 2  ;;  %p58_p5 = por %p57_p0, %p56_p13 }
  0x14   : > { %s688_s30 = scalar_select %p47_p12, %s590_s14, %s49_s29  }
  0x15   : > { %p692_p7 = por %p86_p2, %p56_p13  ;;  %s126_s5 = sand.u32 1, %s590_s14  }
  0x16   : > { %s392_s6 = sshll.u32 %s594_s0, 3  ;;  %s358_s7 = sshll.u32 %s126_s5, 5 }
  0x17   : > { %s135_s10 = scalar_lea.hbm %s767_s2, %s392_s6  ;;  %s130_s16 = scalar_lea.vmem [#allocation7], %s358_s7 }
  0x18   : > { %s136_s11 = sshll.u32 %s135_s10, 4  ;;  %s138_s19 = sshll.u32 %s130_s16, 4  ;;  %s137_s11 = int_to_ptr.hbm [resolvable:$true] %s136_s11  ;;  %s139_s19 = int_to_ptr.vmem [resolvable:$true] %s138_s19 }
  0x19   : > { %p703_p9 = pnand %p420_p3, %p58_p5  ;;  %s127_s21 = scalar_lea.sflag [#allocation8], %s126_s5 }
  0x1a   : > { %s494_s23 = sshra.s32 %s137_s11, 4  ;;  %s501_s28 = scalar_lea.hbm %s767_s2, 64  ;;  %s495_s23 = int_to_ptr.hbm [resolvable:$true] %s494_s23 }
  0x1b   : > { %s496_s24 = scalar_lea.hbm %s495_s23, 32  ;;  %p498_p10 = pneg %p703_p9 }
  0x1c   : > { %p497_p2 = scmp.ne.s32.totalorder %s495_s23, %s496_s24  ;;  %p502_p0 = scmp.lt.s32.totalorder %s495_s23, %s767_s2 }
  0x1d   : > { %p503_p3 = scmp.lt.s32.totalorder %s501_s28, %s496_s24 }
  0x1e   : > { %p499_p12 = pnand %p498_p10, %p497_p2 }
  0x1f   : > { %p504_p5 = por %p503_p3, %p502_p0 }
  0x20   : > { %p500_p13 = pneg %p499_p12 }
  0x22   : > { %p505_p11 = pnand %p504_p5, %p500_p13 }
  0x24   : > { %508 = shalt.err (!%p505_p11)
}
  0x25   : > { %s599_s5 = smov 256   ;;  %s600_s7 = smov 128  }
  0x26   : > { %s601_s8 = smov 8   ;;  %150 = sbr.rel (%p668_p8) target bundleno = 198 (0xc6), region = 28 }
  0x27   : > { %414 = dma.hbm_to_vmem [thread:$0]  (!%p703_p9), %s137_s11, 512, %s139_s19, %s127_s21, %s599_s5, %s600_s7, %s601_s8  }
  0x2b   : > { %569 = dma.done.wait (%p63_p1), [#allocation5], 128  }
  0x2c   : > { %571 = vsyncadd (%p63_p1), [#allocation5], 4294967168  ;;  %s724_s9 = sand.u32 1, %s586_s13  }
  0x2d   : > { %s363_s10 = sshll.u32 %s724_s9, 5  ;;  %s158_s16 = scalar_lea.sflag [#allocation8], %s724_s9 }
  0x2e   : > { %s161_s23 = scalar_lea.vmem [#allocation7], %s363_s10 }
  0x2f   : > { %573 = dma.done.wait (%p655_p4), %s158_s16, 512  }
  0x30   : > { %575 = vsyncadd (%p655_p4), %s158_s16, 4294966784  ;;  %v379_v0 = vld [vmem:[%s161_s23 + $0x10] sm:$0xf]  ;;  %v397_v1 = vld [vmem:[%s161_s23 + $0x14] sm:$0xf0]  ;;  %vm217_vm0 = vcmask 261120  }
  0x31   : > { %v396_v2 = vld [vmem:[%s161_s23 + $0x14] sm:$0xf]  ;;  %v380_v3 = vor.u32 %v397_v1, %v379_v0  ;;  %v381_v4 = vld [vmem:[%s161_s23 + $0x18] sm:$0xf0]  ;;  %v371_v5 = vld [vmem:[%s161_s23] sm:$0xf] }
  0x32   : > { %v395_v6 = vld [vmem:[%s161_s23 + $0x4] sm:$0xf0]  ;;  %v384_v7 = vor.u32 %v396_v2, %v381_v4  ;;  %v394_v8 = vld [vmem:[%s161_s23 + $0x4] sm:$0xf]  ;;  %v373_v9 = vld [vmem:[%s161_s23 + $0x8] sm:$0xf0] }
  0x33   : > { %227 = vmatpush.bf16.msra.mxu0 %v380_v3  ;;  %v372_v10 = vor.u32 %v395_v6, %v371_v5  ;;  %v376_v11 = vor.u32 %v394_v8, %v373_v9  ;;  %v393_v12 = vld [vmem:[#allocation4] sm:$0xff]  ;;  %s398_s17 = sshll.u32 %s646_s15, 4  ;;  %s182_s22 = scalar_lea.vmem [#allocation9], %s363_s10 }
  0x34   : > { %241 = vmatpush.bf16.msra.mxu1 %v384_v7  ;;  %s265_s20 = scalar_lea.hbm %s768_s3, %s398_s17  ;;  %s266_s21 = sshll.u32 %s182_s22, 4  ;;  %s267_s21 = int_to_ptr.vmem [resolvable:$true] %s266_s21 }
  0x35   : > { %s268_s24 = sshll.u32 %s265_s20, 4  ;;  %s254_s26 = scalar_lea.sflag [#allocation6], %s724_s9  ;;  %s269_s24 = int_to_ptr.hbm [resolvable:$true] %s268_s24 }
  0x36   : > { %s538_s15 = sshra.s32 %s269_s24, 4  ;;  %s544_s6 = scalar_lea.hbm %s768_s3, 64  ;;  %s539_s15 = int_to_ptr.hbm [resolvable:$true] %s538_s15 }
  0x37   : > { %228 = vmatpush.bf16.msra.mxu0 %v372_v10  ;;  %s540_s27 = scalar_lea.hbm %s539_s15, 32  ;;  %p545_p11 = scmp.lt.s32.totalorder %s539_s15, %s768_s3 }
  0x38   : > { %242 = vmatpush.bf16.msra.mxu1 %v376_v11  ;;  %p541_p1 = scmp.ne.s32.totalorder %s539_s15, %s540_s27  ;;  %p546_p9 = scmp.lt.s32.totalorder %s544_s6, %s540_s27 }
  0x3a   : > { %385 = vmatmul.msk.bf16.vlgmr.msra.gmra.mxu0 %vm217_vm0, %v393_v12  ;;  %p542_p4 = pnand %p541_p1, %p692_p7  ;;  %p547_p2 = por %p546_p9, %p545_p11 }
  0x3b   : > { %386 = vmatmul.msk.bf16.vlgmr.msra.gmra.mxu1 %vm217_vm0, %v393_v12 }
  0x3c   : > { %p543_p8 = pneg %p542_p4 }
  0x3e   : > { %p548_p10 = pnand %p547_p2, %p543_p8 }
  0xb7   : > { %v230_v13 = vpop.f32.mrf.mxu0 }
  0xb8   : > { %249 = vst [vmem:[%s182_s22] sm:$0xff] %v230_v13  ;;  %v244_v14 = vpop.f32.mrf.mxu1 }
  0xb9   : > { %250 = vst [vmem:[%s182_s22 + $0x8] sm:$0xff] %v244_v14 }
  0xbf   : > { %v232_v15 = vpop.f32.mrf.mxu0 }
  0xc0   : > { %251 = vst [vmem:[%s182_s22 + $0x10] sm:$0xff] %v232_v15  ;;  %v246_v16 = vpop.f32.mrf.mxu1 }
  0xc1   : > { %252 = vst [vmem:[%s182_s22 + $0x18] sm:$0xff] %v246_v16 }
  0xc2   : > { %551 = shalt.err (!%p548_p10)
}
  0xc3   : > { %s602_s8 = smov 256   ;;  %s603_s9 = smov 512  }
  0xc4   : > { %s604_s10 = smov 16  }
  0xc5   : > { %405 = dma.vmem_to_hbm [thread:$0]  (%p692_p7), %s267_s21, 512, %s269_s24, %s254_s26, %s602_s8, %s603_s9, %s604_s10  }
  0xc6 PF: > { %s283_s16 = sand.u32 1, %s582_s12   ;;  %p774_p12 = scmp.ge.s32.totalorder %s594_s0, 2 }
  0xc7   : > { %s284_s23 = scalar_lea.sflag [#allocation6], %s283_s16 }
  0xc8   : > { %p416_p13 = pnand %p774_p12, %p660_p6 }
  0xca   : > { %p417_p0 = pneg %p416_p13 }
  0xcc   : > { %577 = dma.done.wait (%p417_p0), %s284_s23, 512  }
  0xcd   : > { %579 = vsyncadd (%p417_p0), %s284_s23, 4294966784  ;;  %p18_p3 = scmp.ge.s32.totalorder %s678_s25, 4   ;;  %s775_s12 = smov %s586_s13 }
  0xce   : > { %s776_s13 = smov %s590_s14  ;;  %s777_s14 = smov %s688_s30 }
  0xcf   : > { %s778_s0 = smov %s678_s25  ;;  %20 = sbr.rel (!%p18_p3) target bundleno = 6 (0x6), region = 78 }
  0xd4   :  { %290 = vsyncpa [#allocation5], 1 }
  0xd5   :  { %292 = vsyncpa [#allocation5 + $0x1], 1 }
  0xd6   :  { %293 = vsyncpa [#allocation8], 1 }
  0xd7   :  { %295 = vsyncpa [#allocation8 + $0x1], 1 }
  0xd8   :  { %296 = vsyncpa [#allocation6], 1 }
  0xd9   :  { %298 = vsyncpa [#allocation6 + $0x1], 1 }

</bundles_post_ra>
